<compile_context>
chip_gen: v5e
topology: v5e:2x2
jax: 0.10.0
libtpu: 0.0.40
codegen_flags: <defaults>
</compile_context>

<pallas_src>
import functools

import numpy as np
import jax
import jax.numpy as jnp
from jax.experimental import pallas as pl
from jax.experimental.pallas import tpu as pltpu


def _layernorm_kernel(x_ref, g_ref, b_ref, o_ref, *, eps):
    # x_ref: (TILE, H) rows; g_ref / b_ref: (1, H) affine params (native dtype).
    x = x_ref[...].astype(jnp.float32)
    inv_h = jnp.float32(1.0 / x.shape[-1])
    mean = jnp.sum(x, axis=-1, keepdims=True) * inv_h
    mean_sq = jnp.sum(x * x, axis=-1, keepdims=True) * inv_h
    # Biased variance (matches torch BertLayerNorm); clamp >=0 against f32
    # cancellation in the E[x^2] - E[x]^2 form.
    var = jnp.maximum(mean_sq - mean * mean, jnp.float32(0.0))
    inv_std = jax.lax.rsqrt(var + jnp.float32(eps))          # EUP slot
    g = g_ref[...].astype(jnp.float32)
    b = b_ref[...].astype(jnp.float32)
    o_ref[...] = ((x - mean) * inv_std * g + b).astype(o_ref.dtype)


def _round_up(n, m):
    return ((n + m - 1) // m) * m


def _vmem_limit_bytes():
    """Scoped-VMEM target: ~75% of physical VMEM, conservative fallback 48 MiB."""
    try:
        phys = int(getattr(pltpu.get_tpu_info(), "vmem_capacity_bytes"))
    except Exception:
        phys = 64 * 1024 * 1024            # v7x per-TensorCore physical VMEM
    return (phys * 3) // 4


def _pick_tile(n_rows, H, dtype, tile_budget_bytes):
    """Largest sublane-aligned row tile whose pipeline buffers + temps fit the budget."""
    itemsize = jnp.dtype(dtype).itemsize
    align = max(8, 32 // itemsize)         # 8 for f32, 16 for bf16, 32 for int8/fp8
    # Per row of tile: double-buffered input + output (itemsize each) plus
    # ~2 full-tile f32 temporaries inside the kernel.
    per_row = H * (4 * itemsize + 2 * 4)
    tile = int(tile_budget_bytes // max(per_row, 1))
    tile = (tile // align) * align
    tile = min(max(tile, align), 2048)                      # diminishing returns past ~2048 rows
    tile = min(tile, _round_up(n_rows, align))              # never larger than the padded row count
    if n_rows > align:
        # Guarantee >= 2 grid steps so the parallel axis shards across v7x's 2 TCs.
        half_rows = _round_up(-(-n_rows // 2), align)
        tile = min(tile, half_rows)
    return max(tile, align)


def bert_layer_norm(x, weight, bias, eps=1e-12):
    """LayerNorm over the last axis of x with learned (weight, bias), eps inside sqrt."""
    orig_shape = x.shape
    H = orig_shape[-1]
    n_rows = int(np.prod(orig_shape[:-1])) if len(orig_shape) > 1 else 1

    x2 = x.reshape(n_rows, H)
    g2 = weight.reshape(1, H)              # native dtype; cast happens inside the kernel
    b2 = bias.reshape(1, H)

    vmem_limit = _vmem_limit_bytes()
    tile = _pick_tile(n_rows, H, x.dtype, tile_budget_bytes=vmem_limit // 2)
    grid = (pl.cdiv(n_rows, tile),)        # cdiv grid: partial last block is masked by Pallas

    out = pl.pallas_call(
        functools.partial(_layernorm_kernel, eps=eps),
        out_shape=jax.ShapeDtypeStruct((n_rows, H), x.dtype),
        grid=grid,
        in_specs=[
            pl.BlockSpec((tile, H), lambda i: (i, 0)),      # x rows, (TILE, H) tiles
            pl.BlockSpec((1, H), lambda i: (0, 0)),         # gamma (same block every step)
            pl.BlockSpec((1, H), lambda i: (0, 0)),         # beta
        ],
        out_specs=pl.BlockSpec((tile, H), lambda i: (i, 0)),
        compiler_params=pltpu.CompilerParams(
            dimension_semantics=("parallel",),              # independent blocks -> megacore on v7x
            vmem_limit_bytes=vmem_limit,                    # raise v5e's 16 MiB scoped default
        ),
    )(x2, g2, b2)
    return out.reshape(orig_shape)


def _reference(x, weight, bias, eps=1e-12):
    xf = x.astype(jnp.float32)
    u = jnp.mean(xf, axis=-1, keepdims=True)
    s = jnp.mean((xf - u) ** 2, axis=-1, keepdims=True)
    y = (xf - u) / jnp.sqrt(s + eps)
    return (weight.astype(jnp.float32) * y + bias.astype(jnp.float32)).astype(x.dtype)


if __name__ == "__main__":
    key = jax.random.PRNGKey(0)
    kx, kw, kb, kx2 = jax.random.split(key, 4)

    # Small BERT-shaped config: batch=2, seq=8, hidden=256 (hidden lane-aligned).
    B, S, H = 2, 8, 256
    x = jax.random.normal(kx, (B, S, H), dtype=jnp.float32)
    weight = 1.0 + 0.1 * jax.random.normal(kw, (H,), dtype=jnp.float32)   # LN gamma
    bias = 0.05 * jax.random.normal(kb, (H,), dtype=jnp.float32)          # LN beta

    out = jax.block_until_ready(bert_layer_norm(x, weight, bias))
    assert out.shape == (B, S, H)
    np.testing.assert_allclose(np.asarray(out), np.asarray(_reference(x, weight, bias)),
                               rtol=1e-5, atol=1e-5)

    # Odd row count (3 * 5 = 15 rows) exercises the masked partial last block of the cdiv grid.
    x_odd = jax.random.normal(kx2, (3, 5, H), dtype=jnp.float32)
    out_odd = jax.block_until_ready(bert_layer_norm(x_odd, weight, bias))
    np.testing.assert_allclose(np.asarray(out_odd), np.asarray(_reference(x_odd, weight, bias)),
                               rtol=1e-5, atol=1e-5)

    print("KERNEL_OK")
</pallas_src>

<mosaic_0001>
module attributes {stable_mosaic.version = 11 : i64} {
  func.func @_layernorm_kernel(%arg0: i32, %arg1: memref<8x256xf32, #tpu.memory_space<vmem>>, %arg2: memref<1x256xf32, #tpu.memory_space<vmem>>, %arg3: memref<1x256xf32, #tpu.memory_space<vmem>>, %arg4: memref<8x256xf32, #tpu.memory_space<vmem>>) attributes {dimension_semantics = [#tpu.dimension_semantics<parallel>], iteration_bounds = array<i64: 2>, scalar_prefetch = 0 : i64, scratch_operands = 0 : i64, tpu.core_type = #tpu.core_type<tc>, window_params = [{transform_indices = @transform_0, window_bounds = array<i64: 8, 256>}, {pipeline_mode = #tpu.pipeline_mode<synchronous>, transform_indices = @transform_1, window_bounds = array<i64: 1, 256>}, {pipeline_mode = #tpu.pipeline_mode<synchronous>, transform_indices = @transform_2, window_bounds = array<i64: 1, 256>}, {transform_indices = @transform_3, window_bounds = array<i64: 8, 256>}]} {
    %c0 = arith.constant 0 : index
    %c0_0 = arith.constant 0 : index
    %0 = vector.load %arg1[%c0, %c0_0] : memref<8x256xf32, #tpu.memory_space<vmem>>, vector<8x256xf32>
    %cst = arith.constant dense<0.000000e+00> : vector<8xf32>
    %1 = vector.multi_reduction <add>, %0, %cst [1] : vector<8x256xf32> to vector<8xf32>
    %2 = vector.shape_cast %1 : vector<8xf32> to vector<8x1xf32>
    %cst_1 = arith.constant 3.906250e-03 : f32
    %3 = vector.broadcast %cst_1 : f32 to vector<8x1xf32>
    %4 = arith.mulf %2, %3 : vector<8x1xf32>
    %5 = arith.mulf %0, %0 : vector<8x256xf32>
    %cst_2 = arith.constant dense<0.000000e+00> : vector<8xf32>
    %6 = vector.multi_reduction <add>, %5, %cst_2 [1] : vector<8x256xf32> to vector<8xf32>
    %7 = vector.shape_cast %6 : vector<8xf32> to vector<8x1xf32>
    %cst_3 = arith.constant 3.906250e-03 : f32
    %8 = vector.broadcast %cst_3 : f32 to vector<8x1xf32>
    %9 = arith.mulf %7, %8 : vector<8x1xf32>
    %10 = arith.mulf %4, %4 : vector<8x1xf32>
    %11 = arith.subf %9, %10 : vector<8x1xf32>
    %cst_4 = arith.constant 0.000000e+00 : f32
    %12 = vector.broadcast %cst_4 : f32 to vector<8x1xf32>
    %13 = arith.maximumf %11, %12 : vector<8x1xf32>
    %cst_5 = arith.constant 9.99999996E-13 : f32
    %14 = vector.broadcast %cst_5 : f32 to vector<8x1xf32>
    %15 = arith.addf %13, %14 : vector<8x1xf32>
    %16 = math.rsqrt %15 : vector<8x1xf32>
    %c0_6 = arith.constant 0 : index
    %c0_7 = arith.constant 0 : index
    %17 = vector.load %arg2[%c0_6, %c0_7] : memref<1x256xf32, #tpu.memory_space<vmem>>, vector<1x256xf32>
    %c0_8 = arith.constant 0 : index
    %c0_9 = arith.constant 0 : index
    %18 = vector.load %arg3[%c0_8, %c0_9] : memref<1x256xf32, #tpu.memory_space<vmem>>, vector<1x256xf32>
    %19 = vector.broadcast %4 : vector<8x1xf32> to vector<8x256xf32>
    %20 = arith.subf %0, %19 : vector<8x256xf32>
    %21 = vector.broadcast %16 : vector<8x1xf32> to vector<8x256xf32>
    %22 = arith.mulf %20, %21 : vector<8x256xf32>
    %23 = vector.broadcast %17 : vector<1x256xf32> to vector<8x256xf32>
    %24 = arith.mulf %22, %23 : vector<8x256xf32>
    %25 = vector.broadcast %18 : vector<1x256xf32> to vector<8x256xf32>
    %26 = arith.addf %24, %25 : vector<8x256xf32>
    %c0_10 = arith.constant 0 : index
    %c0_11 = arith.constant 0 : index
    %27 = vector.load %arg4[%c0_10, %c0_11] : memref<8x256xf32, #tpu.memory_space<vmem>>, vector<8x256xf32>
    tpu.vector_store %arg4[%c0_10, %c0_11], %26 {strides = array<i32>} : memref<8x256xf32, #tpu.memory_space<vmem>>, vector<8x256xf32>,
    return
  }
  func.func @transform_0(%arg0: i32) -> (i32, i32) {
    %c0_i32 = arith.constant 0 : i32
    %c0_i32_0 = arith.constant 0 : i32
    return %arg0, %c0_i32 : i32, i32
  }
  func.func @transform_1(%arg0: i32) -> (i32, i32) {
    %c0_i32 = arith.constant 0 : i32
    %c0_i32_0 = arith.constant 0 : i32
    %c0_i32_1 = arith.constant 0 : i32
    return %c0_i32, %c0_i32_0 : i32, i32
  }
  func.func @transform_2(%arg0: i32) -> (i32, i32) {
    %c0_i32 = arith.constant 0 : i32
    %c0_i32_0 = arith.constant 0 : i32
    %c0_i32_1 = arith.constant 0 : i32
    return %c0_i32, %c0_i32_0 : i32, i32
  }
  func.func @transform_3(%arg0: i32) -> (i32, i32) {
    %c0_i32 = arith.constant 0 : i32
    %c0_i32_0 = arith.constant 0 : i32
    return %arg0, %c0_i32 : i32, i32
  }
}

</mosaic_0001>

<bundles_post_ra>
// kernel: tpu_custom_call.1
= control target key start
LH: loop header
LB: loop body
LE: loop exit
PB: predicated region body
PF: predicated region fallthrough
CT: control target
= control target key end

     0   :  { %8 = vsyncpa [#allocation3], 0  ;;  %s790_s0 = inlined_call_operand.hbm [shape: f32[16,256], index: 0, kind: input, shape index: {}]   ;;  %s791_s1 = inlined_call_operand.hbm [shape: f32[1,256], index: 1, kind: input, shape index: {}]   ;;  %s792_s2 = inlined_call_operand.hbm [shape: f32[1,256], index: 2, kind: input, shape index: {}]   ;;  %s793_s3 = inlined_call_operand.hbm [shape: f32[16,256], index: 3, kind: output, shape index: {}]  }
   0x1   :  { %10 = vsyncpa [#allocation3 + $0x1], 0 }
   0x2   :  { %11 = vsyncpa [#allocation6], 0 }
   0x3   :  { %12 = vsyncpa [#allocation4], 0 }
   0x4   :  { %14 = vsyncpa [#allocation4 + $0x1], 0  ;;  %s645_s12 = smov 0   ;;  %s647_s13 = smov 0  }
   0x5   :  { %s649_s14 = smov 0   ;;  %s651_s15 = smov 0  }
   0x6 LB: > { %s666_s16 = sadd.s32 4294967295, %s621_s15   ;;  %s372_s17 = sadd.s32 4294967294, %s621_s15   ;;  %s621_s15 = sphi %s651_s15, %s803_s15   ;;  %s617_s14 = sphi %s649_s14, %s802_s14   ;;  %s613_s13 = sphi %s647_s13, %s801_s13   ;;  %s609_s12 = sphi %s645_s12, %s800_s12  }
   0x7   : > { %p40_p0 = scmp.ne.s32.totalorder %s613_s13, %s609_s12  ;;  %p41_p1 = scmp.eq.s32.totalorder %s666_s16, 0 }
   0x8   : > { %p106_p2 = scmp.eq.s32.totalorder %s666_s16, 1  ;;  %p112_p3 = scmp.eq.s32.totalorder %s372_s17, 1 }
   0x9   : > { %p675_p4 = por %p41_p1, %p40_p0  ;;  %p373_p5 = scmp.ge.s32.totalorder %s621_s15, 1 }
   0xa   : > { %p680_p6 = por %p112_p3, %p40_p0  ;;  %p119_p7 = scmp.lt.s32.totalorder %s621_s15, 3 }
   0xb   : > { %s131_s22 = sshll.u32 %s791_s1, 4  ;;  %s623_s24 = smov [#allocation5]   ;;  %s132_s22 = int_to_ptr.hbm [resolvable:$true] %s131_s22 }
   0xc   : > { %p688_p8 = pnand %p373_p5, %p119_p7  ;;  %s133_s25 = sshll.u32 %s623_s24, 4  ;;  %s134_s25 = int_to_ptr.vmem [resolvable:$true] %s133_s25 }
   0xd   : > { %s143_s28 = sshll.u32 %s792_s2, 4  ;;  %s624_s29 = smov [#allocation7]   ;;  %s144_s28 = int_to_ptr.hbm [resolvable:$true] %s143_s28 }
   0xe   : > { %p404_p10 = pneg %p688_p8  ;;  %s145_s30 = sshll.u32 %s624_s29, 4  ;;  %s146_s30 = int_to_ptr.vmem [resolvable:$true] %s145_s30 }
   0xf   : > { %s701_s4 = sadd.s32 1, %s621_s15   ;;  %s27_s5 = sadd.s32 1, %s617_s14 }
  0x10   : > { %p405_p11 = pnand %p404_p10, %p41_p1  ;;  %s24_s6 = ssub.s32 %s621_s15, %s701_s4 }
  0x11   : > { %p34_p12 = scmp.ne.s32.totalorder %s617_s14, %s613_s13  ;;  %p25_p13 = scmp.eq.s32.totalorder %s24_s6, 0 }
  0x12   : > { %407 = dma.hbm_to_vmem [thread:$0]  (!%p405_p11), %s132_s22, 32, %s134_s25, [#allocation6]  }
  0x13   : > { %410 = dma.hbm_to_vmem [thread:$0]  (!%p405_p11), %s144_s28, 32, %s146_s30, [#allocation6]  }
  0x14   : > { %p35_p0 = scmp.eq.s32.totalorder %s621_s15, 0  ;;  %p711_p3 = por %p106_p2, %p34_p12 }
  0x15   : > { %p421_p5 = scmp.lt.s32.totalorder %s621_s15, 2  ;;  %s156_s9 = sand.u32 1, %s617_s14  }
  0x16   : > { %s717_s8 = scalar_select %p25_p13, %s617_s14, %s27_s5  }
  0x17   : > { %p36_p7 = por %p35_p0, %p34_p12  ;;  %s377_s10 = sshll.u32 %s156_s9, 4 }
  0x18   : > { %s390_s11 = sshll.u32 %s621_s15, 4  ;;  %s160_s22 = scalar_lea.vmem [#allocation2], %s377_s10 }
  0x19   : > { %s165_s21 = scalar_lea.hbm %s790_s0, %s390_s11  ;;  %s169_s24 = sshll.u32 %s160_s22, 4  ;;  %s170_s24 = int_to_ptr.vmem [resolvable:$true] %s169_s24 }
  0x1a   : > { %s167_s25 = sshll.u32 %s165_s21, 4  ;;  %p724_p2 = pnand %p421_p5, %p36_p7  ;;  %s168_s25 = int_to_ptr.hbm [resolvable:$true] %s167_s25 }
  0x1b   : > { %s157_s27 = scalar_lea.sflag [#allocation3], %s156_s9  ;;  %s521_s28 = sshra.s32 %s168_s25, 4  ;;  %s522_s28 = int_to_ptr.hbm [resolvable:$true] %s521_s28 }
  0x1c   : > { %s523_s29 = scalar_lea.hbm %s522_s28, 16  ;;  %p525_p11 = pneg %p724_p2 }
  0x1d   : > { %p524_p10 = scmp.ne.s32.totalorder %s522_s28, %s523_s29  ;;  %s528_s6 = scalar_lea.hbm %s790_s0, 32 }
  0x1e   : > { %p529_p0 = scmp.lt.s32.totalorder %s522_s28, %s790_s0  ;;  %p530_p5 = scmp.lt.s32.totalorder %s528_s6, %s523_s29 }
  0x1f   : > { %p526_p12 = pnand %p525_p11, %p524_p10 }
  0x20   : > { %p531_p7 = por %p530_p5, %p529_p0 }
  0x21   : > { %p527_p13 = pneg %p526_p12 }
  0x23   : > { %p532_p9 = pnand %p531_p7, %p527_p13 }
  0x25   : > { %535 = shalt.err (!%p532_p9)
}
  0x26   : > { %414 = dma.hbm_to_vmem [thread:$0]  (!%p724_p2), %s168_s25, 256, %s170_s24, %s157_s27  }
  0x27   : > { %178 = sbr.rel (%p688_p8) target bundleno = 210 (0xd2), region = 32  ;;  %s741_s9 = sand.u32 (!%p688_p8), 1, %s613_s13  }
  0x28   : > { %s381_s17 = sshll.u32 (!%p688_p8), %s741_s9, 4  ;;  %s181_s20 = scalar_lea.sflag (!%p688_p8), [#allocation3], %s741_s9 }
  0x29   : > { %s184_s21 = scalar_lea.vmem (!%p688_p8), [#allocation2], %s381_s17 }
  0x2c   : > { %596 = dma.done.wait (%p675_p4), %s181_s20, 256  }
  0x2d   : > { %598 = vsyncadd (%p675_p4), %s181_s20, 4294967040 }
  0x2e   : > { %600 = dma.done.wait (%p41_p1), [#allocation6], 64  }
  0x2f   : > { %602 = vsyncadd (%p41_p1), [#allocation6], 4294967232  ;;  %v218_v0 = vld [vmem:[%s184_s21] sm:$0xff]  ;;  %v219_v1 = vld [vmem:[%s184_s21 + $0x8] sm:$0xff]  ;;  %s391_s18 = sshll.u32 %s666_s16, 4  ;;  %s217_s16 = scalar_lea.vmem [#allocation8], %s381_s17 }
  0x30   : > { %v220_v2 = vadd.f32 %v219_v1, %v218_v0  ;;  %v224_v3 = vmul.f32 %v218_v0, %v218_v0  ;;  %v225_v4 = vmul.f32 %v219_v1, %v219_v1  ;;  %v244_v18 = vld [vmem:[#allocation5] sm:$0x3]  ;;  %v245_v21 = vld [vmem:[#allocation7] sm:$0x3]  ;;  %s278_s24 = scalar_lea.hbm %s793_s3, %s391_s18  ;;  %s280_s25 = sshll.u32 %s217_s16, 4  ;;  %s281_s25 = int_to_ptr.vmem [resolvable:$true] %s280_s25 }
  0x31   : > { %v251_v24 = vperm.slane %v244_v18, 0  ;;  %v252_v25 = vperm.slane %v244_v18, 1  ;;  %v258_v29 = vperm.slane %v245_v21, 0  ;;  %v259_v30 = vperm.slane %v245_v21, 1  ;;  %s282_s26 = sshll.u32 %s278_s24, 4  ;;  %s267_s27 = scalar_lea.sflag [#allocation4], %s741_s9  ;;  %s283_s26 = int_to_ptr.hbm [resolvable:$true] %s282_s26 }
  0x32   : > { %221 = vadd.xlane.f32.xlu0 %v220_v2  ;;  %v226_v5 = vadd.f32 %v225_v4, %v224_v3  ;;  %s565_s28 = sshra.s32 %s283_s26, 4  ;;  %s571_s6 = scalar_lea.hbm %s793_s3, 32  ;;  %s566_s28 = int_to_ptr.hbm [resolvable:$true] %s565_s28 }
  0x33   : > { %s567_s29 = scalar_lea.hbm %s566_s28, 16  ;;  %p572_p9 = scmp.lt.s32.totalorder %s566_s28, %s793_s3 }
  0x34   : > { %p568_p1 = scmp.ne.s32.totalorder %s566_s28, %s567_s29  ;;  %p573_p2 = scmp.lt.s32.totalorder %s571_s6, %s567_s29 }
  0x36   : > { %p569_p4 = pnand %p568_p1, %p711_p3  ;;  %p574_p10 = por %p573_p2, %p572_p9 }
  0x38   : > { %p570_p8 = pneg %p569_p4 }
  0x3a   : > { %227 = vadd.xlane.f32.xlu0 %v226_v5  ;;  %p575_p11 = pnand %p574_p10, %p570_p8 }
  0xa5   : > { %v222_v6 = vpop.xlane.xlu0 %221 }
  0xa6   : > { %v223_v7 = vmul.f32 0.00390625, %v222_v6 }
  0xa8   : > { %v230_v9 = vmul.f32 %v223_v7, %v223_v7  ;;  %v246_v22 = vsub.f32 %v218_v0, %v223_v7  ;;  %v247_v23 = vsub.f32 %v219_v1, %v223_v7 }
  0xad   : > { %v228_v8 = vpop.xlane.xlu0 %227 }
  0xae   : > { %v229_v10 = vmul.f32 0.00390625, %v228_v8 }
  0xb0   : > { %v231_v11 = vsub.f32 %v229_v10, %v230_v9 }
  0xb2   : > { %v232_v12 = vmax.f32 %v231_v11, 0.0 }
  0xb4   : > { %v233_v13 = vadd.f32 1e-12, %v232_v12 }
  0xb6   : > { %459 = vrsqrt.f32 %v233_v13  ;;  %vm240_vm1 = vweird.f32 %v233_v13 }
  0xbc   : > { %v460_v14 = vpop.eup %459 }
  0xbd   : > { %v235_v15 = vmul.f32 %v460_v14, %v233_v13  ;;  %vm241_vm0 = vweird.f32 %v460_v14 }
  0xbe   : > { %vm242_vm2 = vmor %vm240_vm1, %vm241_vm0 }
  0xbf   : > { %v236_v16 = vmul.f32 %v460_v14, %v235_v15 }
  0xc1   : > { %v237_v17 = vmul.f32 0.5, %v236_v16 }
  0xc3   : > { %v238_v19 = vsub.f32 1.5, %v237_v17 }
  0xc5   : > { %v239_v20 = vmul.f32 %v460_v14, %v238_v19 }
  0xc7   : > { %v243_v26 = vsel %vm242_vm2, %v460_v14, %v239_v20 }
  0xc8   : > { %v248_v27 = vmul.f32 %v246_v22, %v243_v26  ;;  %v249_v28 = vmul.f32 %v247_v23, %v243_v26 }
  0xca   : > { %v255_v31 = vmul.f32 %v251_v24, %v248_v27  ;;  %v256_v32 = vmul.f32 %v252_v25, %v249_v28 }
  0xcc   : > { %v262_v33 = vadd.f32 %v258_v29, %v255_v31  ;;  %v263_v34 = vadd.f32 %v259_v30, %v256_v32 }
  0xce   : > { %264 = vst [vmem:[%s217_s16] sm:$0xff] %v262_v33 }
  0xcf   : > { %265 = vst [vmem:[%s217_s16 + $0x8] sm:$0xff] %v263_v34 }
  0xd0   : > { %578 = shalt.err (!%p575_p11)
}
  0xd1   : > { %402 = dma.vmem_to_hbm [thread:$0]  (%p711_p3), %s281_s25, 256, %s283_s26, %s267_s27  }
  0xd2 PF: > { %s294_s9 = sand.u32 1, %s609_s12   ;;  %p799_p12 = scmp.ge.s32.totalorder %s621_s15, 2 }
  0xd3   : > { %s295_s17 = scalar_lea.sflag [#allocation4], %s294_s9 }
  0xd4   : > { %p416_p13 = pnand %p799_p12, %p680_p6 }
  0xd6   : > { %p417_p0 = pneg %p416_p13 }
  0xd8   : > { %604 = dma.done.wait (%p417_p0), %s295_s17, 256  }
  0xd9   : > { %606 = vsyncadd (%p417_p0), %s295_s17, 4294967040  ;;  %p17_p5 = scmp.ge.s32.totalorder %s701_s4, 4   ;;  %s800_s12 = smov %s613_s13 }
  0xda   : > { %s801_s13 = smov %s617_s14  ;;  %s802_s14 = smov %s717_s8 }
  0xdb   : > { %s803_s15 = smov %s701_s4  ;;  %19 = sbr.rel (!%p17_p5) target bundleno = 6 (0x6), region = 85 }
  0xe0   :  { %301 = vsyncpa [#allocation3], 1 }
  0xe1   :  { %303 = vsyncpa [#allocation3 + $0x1], 1 }
  0xe2   :  { %304 = vsyncpa [#allocation6], 1 }
  0xe3   :  { %305 = vsyncpa [#allocation4], 1 }
  0xe4   :  { %307 = vsyncpa [#allocation4 + $0x1], 1 }

</bundles_post_ra>
